<compile_context>
chip_gen: v7x
topology: tpu7x:2x2x1
jax: 0.10.0
libtpu: 0.0.40
codegen_flags: <defaults>
</compile_context>

<pallas_src>
import functools

import jax
import jax.numpy as jnp
from jax.experimental import pallas as pl
from jax.experimental.pallas import tpu as pltpu

NUM_CLASSES = 10
LANE = 128
SUBLANE = 8


def _round_up(x, m):
    return ((x + m - 1) // m) * m


def _pick_tile_b(B, D, n_pad):
    """Largest batch tile whose double-buffered x/out stream fits ~20 MiB."""
    budget = 20 * 1024 * 1024
    resident = D * n_pad * 2 + n_pad * 4            # bf16 W_ens + f32 b_ens
    per_row = 2 * (D * 2 + n_pad * 4)               # 2x-buffered bf16 x row + f32 out row
    tile = max(SUBLANE, (budget - resident) // per_row)
    tile = min(tile, _round_up(B, SUBLANE))
    tile = max(SUBLANE, (tile // SUBLANE) * SUBLANE)
    return int(tile)


def ensemble_kernel(x_ref, w_ref, b_ref, o_ref):
    # x_ref: [TILE_B, Dp] bf16   w_ref: [Dp, N_PAD] bf16 (VMEM-resident)
    # b_ref: [1, N_PAD]   f32    o_ref: [TILE_B, N_PAD] f32
    o_ref[...] = (
        jnp.dot(x_ref[...], w_ref[...], preferred_element_type=jnp.float32)
        + b_ref[...]
    )


@functools.partial(jax.jit, static_argnames=())
def ensemble_forward(x_nchw, params):
    """x_nchw: [B, C, H, W] float32 -> ensemble logits [B, NUM_CLASSES] float32."""
    B, C, H, W = x_nchw.shape
    D = C * H * W
    N = params["w1"].shape[1]
    n_pad = _round_up(N, LANE)
    d_pad = _round_up(D, LANE)

    # ---- Param prep (pure JAX, fused by jit; cheap relative to the x stream) ----
    mean_flat = jnp.broadcast_to(
        params["mean"].reshape(C, 1, 1), (C, H, W)).reshape(D)
    stdinv_flat = jnp.broadcast_to(
        (1.0 / params["std"]).reshape(C, 1, 1), (C, H, W)).reshape(D)

    # Fold NormalizedModel preproc into W1/b1, then fold the ensemble average.
    w1p = stdinv_flat[:, None] * params["w1"]
    b1p = params["b1"] - (mean_flat * stdinv_flat) @ params["w1"]
    w_ens = 0.5 * (w1p + params["w2"])
    b_ens = 0.5 * (b1p + params["b2"])

    # Pad class dim to a full lane width and feature dim to a multiple of 128
    # (zero rows/cols contribute nothing; stores stay unmasked).
    w_ens = jnp.pad(w_ens, ((0, d_pad - D), (0, n_pad - N))).astype(jnp.bfloat16)
    b_ens = jnp.pad(b_ens, ((0, 0), (0, n_pad - N))).astype(jnp.float32)

    # ---- Batch tiling ----
    tile_b = _pick_tile_b(B, d_pad, n_pad)
    b_pad = _round_up(B, tile_b)
    x_flat = x_nchw.reshape(B, D).astype(jnp.bfloat16)
    x_flat = jnp.pad(x_flat, ((0, b_pad - B), (0, d_pad - D)))
    grid = (b_pad // tile_b,)

    out = pl.pallas_call(
        ensemble_kernel,
        out_shape=jax.ShapeDtypeStruct((b_pad, n_pad), jnp.float32),
        grid=grid,
        in_specs=[
            pl.BlockSpec((tile_b, d_pad), lambda i: (i, 0)),   # x: streamed per tile
            pl.BlockSpec((d_pad, n_pad), lambda i: (0, 0)),    # W_ens: VMEM-resident
            pl.BlockSpec((1, n_pad), lambda i: (0, 0)),        # b_ens: VMEM-resident
        ],
        out_specs=pl.BlockSpec((tile_b, n_pad), lambda i: (i, 0)),
        compiler_params=pltpu.CompilerParams(
            dimension_semantics=("parallel",),
            vmem_limit_bytes=32 * 1024 * 1024,
        ),
        cost_estimate=pl.CostEstimate(
            flops=2 * b_pad * d_pad * n_pad,
            transcendentals=0,
            bytes_accessed=(b_pad * d_pad * 2
                            + d_pad * n_pad * 2
                            + b_pad * n_pad * 4),
        ),
    )(x_flat, w_ens, b_ens)

    return out[:B, :N]


def init_params(key, C, H, W):
    D = C * H * W
    k1, k2, k3, k4 = jax.random.split(key, 4)
    return {
        "mean": jnp.array([0.485, 0.456, 0.406], dtype=jnp.float32),
        "std": jnp.array([0.229, 0.224, 0.225], dtype=jnp.float32),
        "w1": jax.random.normal(k1, (D, NUM_CLASSES), jnp.float32) * 0.02,
        "b1": jax.random.normal(k2, (1, NUM_CLASSES), jnp.float32) * 0.01,
        "w2": jax.random.normal(k3, (D, NUM_CLASSES), jnp.float32) * 0.02,
        "b2": jax.random.normal(k4, (1, NUM_CLASSES), jnp.float32) * 0.01,
    }


def reference_forward(x_nchw, params):
    """Unfused f32 reference matching the PyTorch module structure."""
    B, C, H, W = x_nchw.shape
    D = C * H * W
    mean = params["mean"].reshape(1, C, 1, 1)
    std = params["std"].reshape(1, C, 1, 1)
    x_flat = x_nchw.reshape(B, D)
    xn_flat = ((x_nchw - mean) / std).reshape(B, D)
    l1 = xn_flat @ params["w1"] + params["b1"]
    l2 = x_flat @ params["w2"] + params["b2"]
    return (l1 + l2) / 2


if __name__ == "__main__":
    key = jax.random.PRNGKey(0)
    kx, kp = jax.random.split(key)

    # Small CIFAR-like input: batch=2, 3 channels (mean/std are 3-channel), 16x16.
    B, C, H, W = 2, 3, 16, 16
    x = jax.random.uniform(kx, (B, C, H, W), jnp.float32)
    params = init_params(kp, C, H, W)

    out = ensemble_forward(x, params)
    out = jax.block_until_ready(out)

    ref = reference_forward(x, params)
    assert out.shape == (B, NUM_CLASSES)
    # bf16 activation/weight stream (f32 accumulation) -> relaxed tolerance vs f32 ref.
    assert jnp.allclose(out, ref, atol=5e-2, rtol=5e-2), "mismatch vs reference"

    print("KERNEL_OK")
</pallas_src>

<mosaic_0001>
module attributes {stable_mosaic.version = 11 : i64} {
  func.func @ensemble_kernel(%arg0: i32, %arg1: memref<8x768xbf16, #tpu.memory_space<vmem>>, %arg2: memref<768x128xbf16, #tpu.memory_space<vmem>>, %arg3: memref<1x128xf32, #tpu.memory_space<vmem>>, %arg4: memref<8x128xf32, #tpu.memory_space<vmem>>) attributes {dimension_semantics = [#tpu.dimension_semantics<parallel>], iteration_bounds = array<i64: 1>, scalar_prefetch = 0 : i64, scratch_operands = 0 : i64, tpu.core_type = #tpu.core_type<tc>, window_params = [{transform_indices = @transform_0, window_bounds = array<i64: 8, 768>}, {pipeline_mode = #tpu.pipeline_mode<synchronous>, transform_indices = @transform_1, window_bounds = array<i64: 768, 128>}, {pipeline_mode = #tpu.pipeline_mode<synchronous>, transform_indices = @transform_2, window_bounds = array<i64: 1, 128>}, {transform_indices = @transform_3, window_bounds = array<i64: 8, 128>}]} {
    %c0 = arith.constant 0 : index
    %c0_0 = arith.constant 0 : index
    %0 = vector.load %arg1[%c0, %c0_0] : memref<8x768xbf16, #tpu.memory_space<vmem>>, vector<8x768xbf16>
    %c0_1 = arith.constant 0 : index
    %c0_2 = arith.constant 0 : index
    %1 = vector.load %arg2[%c0_1, %c0_2] : memref<768x128xbf16, #tpu.memory_space<vmem>>, vector<768x128xbf16>
    %cst = arith.constant dense<0.000000e+00> : vector<8x128xf32>
    %2 = tpu.matmul %0, %1, %cst {dimension_numbers = #tpu.dot_dimension_numbers<[1], [0], [0], [1], [0, 0, 1, 1], [], []>} : vector<8x768xbf16>, vector<768x128xbf16>, vector<8x128xf32> -> vector<8x128xf32>
    %c0_3 = arith.constant 0 : index
    %c0_4 = arith.constant 0 : index
    %3 = vector.load %arg3[%c0_3, %c0_4] : memref<1x128xf32, #tpu.memory_space<vmem>>, vector<1x128xf32>
    %4 = vector.broadcast %3 : vector<1x128xf32> to vector<8x128xf32>
    %5 = arith.addf %2, %4 : vector<8x128xf32>
    %c0_5 = arith.constant 0 : index
    %c0_6 = arith.constant 0 : index
    %6 = vector.load %arg4[%c0_5, %c0_6] : memref<8x128xf32, #tpu.memory_space<vmem>>, vector<8x128xf32>
    tpu.vector_store %arg4[%c0_5, %c0_6], %5 {strides = array<i32>} : memref<8x128xf32, #tpu.memory_space<vmem>>, vector<8x128xf32>,
    return
  }
  func.func @transform_0(%arg0: i32) -> (i32, i32) {
    %c0_i32 = arith.constant 0 : i32
    %c0_i32_0 = arith.constant 0 : i32
    return %arg0, %c0_i32 : i32, i32
  }
  func.func @transform_1(%arg0: i32) -> (i32, i32) {
    %c0_i32 = arith.constant 0 : i32
    %c0_i32_0 = arith.constant 0 : i32
    %c0_i32_1 = arith.constant 0 : i32
    return %c0_i32, %c0_i32_0 : i32, i32
  }
  func.func @transform_2(%arg0: i32) -> (i32, i32) {
    %c0_i32 = arith.constant 0 : i32
    %c0_i32_0 = arith.constant 0 : i32
    %c0_i32_1 = arith.constant 0 : i32
    return %c0_i32, %c0_i32_0 : i32, i32
  }
  func.func @transform_3(%arg0: i32) -> (i32, i32) {
    %c0_i32 = arith.constant 0 : i32
    %c0_i32_0 = arith.constant 0 : i32
    return %arg0, %c0_i32 : i32, i32
  }
}

</mosaic_0001>

<bundles_post_ra>
// kernel: mul.10
= control target key start
LH: loop header
LB: loop body
LE: loop exit
PB: predicated region body
PF: predicated region fallthrough
CT: control target
= control target key end

     0   :  { %vm5_vm0 = vcmask 1045508   ;;  %s12_s6 = smov 48  ;;  %s34_s11 = smov 48  ;;  %vm7_vm1 = vcmask 130048   ;;  %vm18_vm2 = vcmask 1048448   ;;  %vm29_vm3 = vcmask 917248   ;;  %s204_s0 = inlined_call_operand.vmem [shape: f32[3,16,16], index: 0, kind: input, shape index: {}]   ;;  %s205_s1 = inlined_call_operand.vmem [shape: f32[768], index: 1, kind: output, shape index: {}]  }
   0x1   :  { %v86_v0 = vld [vmem:[%s204_s0 + $0x7] ss:$8 sm:$0xf]   ;;  %v90_v3 = vld [vmem:[%s204_s0 + $0x5] ss:$8 sm:$0xf]  }
   0x2   :  { %v87_v1 = vld [vmem:[%s204_s0 + $0x7] ss:$8 sm:%s12_s6]   ;;  %v91_v4 = vld [vmem:[%s204_s0 + $0x5] ss:$8 sm:%s34_s11]   ;;  %s107_s16 = smov 112   ;;  %s23_s19 = smov 48 }
   0x3   :  { %v15_v2 = vsel %vm5_vm0, %v87_v1, %v86_v0  ;;  %v37_v5 = vsel %vm5_vm0, %v91_v4, %v90_v3  ;;  %v88_v6 = vld [vmem:[%s204_s0 + $0x6] ss:$8 sm:$0xf]   ;;  %s108_s20 = smov 80   ;;  %s45_s25 = smov 48  ;;  %vm40_vm4 = vcmask 786048  }
   0x4   :  { %16 = vrot.lane.b32.xlu0 %v15_v2, %s107_s16  ;;  %38 = vrot.lane.b32.xlu1 %v37_v5, %s108_s20  ;;  %v89_v7 = vld [vmem:[%s204_s0 + $0x6] ss:$8 sm:%s23_s19]   ;;  %s56_s30 = smov 48  ;;  %s109_s4 = smov 96   ;;  %vm51_vm5 = vcmask 654848   ;;  %vm62_vm6 = vcmask 523648  }
   0x5   :  { %v92_v8 = vld [vmem:[%s204_s0 + $0x4] ss:$8 sm:$0xf]   ;;  %v26_v9 = vsel %vm5_vm0, %v89_v7, %v88_v6  ;;  %v94_v11 = vld [vmem:[%s204_s0 + $0x3] ss:$8 sm:$0xf]  }
   0x6   :  { %v93_v10 = vld [vmem:[%s204_s0 + $0x4] ss:$8 sm:%s45_s25]   ;;  %v96_v13 = vld [vmem:[%s204_s0 + $0x2] ss:$8 sm:$0xf]   ;;  %s67_s7 = smov 48 }
   0x7   :  { %v48_v12 = vsel %vm5_vm0, %v93_v10, %v92_v8  ;;  %v95_v14 = vld [vmem:[%s204_s0 + $0x3] ss:$8 sm:%s56_s30]   ;;  %s110_s8 = smov 64   ;;  %v97_v16 = vld [vmem:[%s204_s0 + $0x2] ss:$8 sm:%s67_s7]   ;;  %s78_s11 = smov 48 }
   0x8   :  { %27 = vrot.lane.b32.xlu0 %v26_v9, %s109_s4  ;;  %49 = vrot.lane.b32.xlu1 %v48_v12, %s110_s8  ;;  %v59_v15 = vsel %vm5_vm0, %v95_v14, %v94_v11  ;;  %v70_v17 = vsel %vm5_vm0, %v97_v16, %v96_v13  ;;  %v98_v18 = vld [vmem:[%s204_s0 + $0x1] ss:$8 sm:$0xf]   ;;  %s3_s16 = smov 48  ;;  %s112_s21 = smov 32   ;;  %vm73_vm7 = vcmask 392448  }
   0x9   :  { %v99_v19 = vld [vmem:[%s204_s0 + $0x1] ss:$8 sm:%s78_s11]   ;;  %v2_v20 = vld [vmem:[%s204_s0] ss:$8 sm:$0xf]   ;;  %s113_s24 = smov 16  }
   0xa   :  { %v4_v21 = vld [vmem:[%s204_s0] ss:$8 sm:%s3_s16]   ;;  %s111_s0 = smov 48   ;;  %v81_v23 = vsel %vm5_vm0, %v99_v19, %v98_v18  ;;  %vm84_vm8 = vcmask 261248  }
   0xb   :  { %v6_v22 = vsel %vm5_vm0, %v4_v21, %v2_v20 }
   0xc   :  { %60 = vrot.lane.b32.xlu0 %v59_v15, %s111_s0  ;;  %71 = vrot.lane.b32.xlu1 %v70_v17, %s112_s21  ;;  %8 = vst.msk [vmem:[%s205_s1] sm:$0x3f] %vm7_vm1, %v6_v22  }
  0x10   :  { %82 = vrot.lane.b32.xlu0 %v81_v23, %s113_s24 }
  0x76   :  { %v17_v24 = vpop.permute.xlu0 %16   ;;  %v39_v25 = vpop.permute.xlu1 %38  }
  0x77   :  { %19 = vst.msk [vmem:[%s205_s1] sm:$0x3f] %vm18_vm2, %v17_v24  }
  0x7a   :  { %v28_v26 = vpop.permute.xlu0 %27   ;;  %v50_v27 = vpop.permute.xlu1 %49  }
  0x7b   :  { %30 = vst.msk [vmem:[%s205_s1] sm:$0x3f] %vm29_vm3, %v28_v26  }
  0x7c   :  { %41 = vst.msk [vmem:[%s205_s1] sm:$0x3f] %vm40_vm4, %v39_v25  }
  0x7d   :  { %52 = vst.msk [vmem:[%s205_s1] sm:$0x3f] %vm51_vm5, %v50_v27  }
  0x7e   :  { %v61_v28 = vpop.permute.xlu0 %60   ;;  %v72_v29 = vpop.permute.xlu1 %71  }
  0x7f   :  { %63 = vst.msk [vmem:[%s205_s1] sm:$0x3f] %vm62_vm6, %v61_v28  }
  0x80   :  { %74 = vst.msk [vmem:[%s205_s1] sm:$0x3f] %vm73_vm7, %v72_v29  }
  0x82   :  { %v83_v30 = vpop.permute.xlu0 %82  }
  0x83   :  { %85 = vst.msk [vmem:[%s205_s1] sm:$0x3f] %vm84_vm8, %v83_v30  }

// kernel: mul.13
= control target key start
LH: loop header
LB: loop body
LE: loop exit
PB: predicated region body
PF: predicated region fallthrough
CT: control target
= control target key end

     0   :  { %s34_s0 = inlined_call_operand.vmem [shape: f32[768], index: 0, kind: input, shape index: {}]   ;;  %s35_s1 = inlined_call_operand.vmem [shape: f32[768], index: 1, kind: input, shape index: {}]   ;;  %s36_s2 = inlined_call_operand.vmem [shape: f32[768], index: 2, kind: output, shape index: {}]  }
   0x1   :  { %v3_v0 = vld [vmem:[%s34_s0] sm:$0x3f] }
   0x2   :  { %v4_v1 = vld [vmem:[%s35_s1] sm:$0x3f] }
   0x3   :  { %v7_v2 = vmul.f32 %v4_v1, %v3_v0 }
   0x5   :  { %9 = vst [vmem:[%s36_s2] sm:$0xff] %v7_v2 }

// kernel: ensemble_forward.1
= control target key start
LH: loop header
LB: loop body
LE: loop exit
PB: predicated region body
PF: predicated region fallthrough
CT: control target
= control target key end

     0   :  { %s909_s1 = inlined_call_operand.vmem [shape: bf16[768,128], index: 1, kind: input, shape index: {}]   ;;  %s910_s0 = inlined_call_operand.vmem [shape: bf16[8,768], index: 0, kind: input, shape index: {}]   ;;  %s911_s2 = inlined_call_operand.vmem [shape: f32[1,128], index: 2, kind: input, shape index: {}]   ;;  %s912_s3 = inlined_call_operand.vmem [shape: f32[8,128], index: 3, kind: output, shape index: {}]  }
   0x1   :  { %v676_v0 = vld [vmem:[%s909_s1 + $0x40] sm:$0xff]   ;;  %v680_v4 = vld [vmem:[%s909_s1 + $0x48] sm:$0xff]   ;;  %v684_v8 = vld [vmem:[%s909_s1 + $0x50] sm:$0xff]  }
   0x2   :  { %v677_v1 = vld [vmem:[%s909_s1] sm:$0xff]   ;;  %610 = vmatprep.subr.bf16.mxu0 %v676_v0  ;;  %v681_v5 = vld [vmem:[%s909_s1 + $0x8] sm:$0xff]   ;;  %v685_v9 = vld [vmem:[%s909_s1 + $0x10] sm:$0xff]  }
   0x3   :  { %v678_v2 = vld [vmem:[%s909_s1 + $0xc0] sm:$0xff]   ;;  %611 = vmatpush3.bf16.msra.mxu0 %v677_v1  ;;  %v682_v6 = vld [vmem:[%s909_s1 + $0xc8] sm:$0xff]   ;;  %v686_v10 = vld [vmem:[%s909_s1 + $0xd0] sm:$0xff]  }
   0x4   :  { %v679_v3 = vld [vmem:[%s909_s1 + $0x80] sm:$0xff]   ;;  %632 = vmatprep.subr.bf16.mxu1 %v678_v2  ;;  %612 = vmatprep.subr.bf16.mxu0 %v680_v4  ;;  %v683_v7 = vld [vmem:[%s909_s1 + $0x88] sm:$0xff]   ;;  %v687_v11 = vld [vmem:[%s909_s1 + $0x90] sm:$0xff]  }
   0x5   :  { %633 = vmatpush3.bf16.msra.mxu1 %v679_v3  ;;  %v688_v12 = vld [vmem:[%s909_s1 + $0x58] sm:$0xff]   ;;  %v692_v16 = vld [vmem:[%s909_s1 + $0x60] sm:$0xff]   ;;  %v696_v20 = vld [vmem:[%s909_s1 + $0x68] sm:$0xff]  }
   0x6   :  { %634 = vmatprep.subr.bf16.mxu1 %v682_v6  ;;  %v689_v13 = vld [vmem:[%s909_s1 + $0x18] sm:$0xff]   ;;  %v693_v17 = vld [vmem:[%s909_s1 + $0x20] sm:$0xff]   ;;  %v697_v21 = vld [vmem:[%s909_s1 + $0x28] sm:$0xff]  }
   0x7   :  { %613 = vmatpush3.bf16.msra.mxu0 %v681_v5  ;;  %v690_v14 = vld [vmem:[%s909_s1 + $0xd8] sm:$0xff]   ;;  %v694_v18 = vld [vmem:[%s909_s1 + $0xe0] sm:$0xff]   ;;  %v698_v22 = vld [vmem:[%s909_s1 + $0xe8] sm:$0xff]  }
   0x8   :  { %614 = vmatprep.subr.bf16.mxu0 %v684_v8  ;;  %v691_v15 = vld [vmem:[%s909_s1 + $0x98] sm:$0xff]   ;;  %v695_v19 = vld [vmem:[%s909_s1 + $0xa0] sm:$0xff]   ;;  %v699_v23 = vld [vmem:[%s909_s1 + $0xa8] sm:$0xff]  }
   0x9   :  { %635 = vmatpush3.bf16.msra.mxu1 %v683_v7  ;;  %v700_v24 = vld [vmem:[%s909_s1 + $0x70] sm:$0xff]   ;;  %v704_v28 = vld [vmem:[%s909_s1 + $0x78] sm:$0xff]   ;;  %v15_v31 = vld [vmem:[%s910_s0] sm:$0xff] }
   0xa   :  { %636 = vmatprep.subr.bf16.mxu1 %v686_v10  ;;  %v701_v25 = vld [vmem:[%s909_s1 + $0x30] sm:$0xff]   ;;  %v705_v29 = vld [vmem:[%s909_s1 + $0x38] sm:$0xff]   ;;  %v556_v32 = vcombine.low %v15_v31, %v15_v31  ;;  %v557_v33 = vcombine.high %v15_v31, %v15_v31  ;;  %v710_v35 = vld [vmem:[%s909_s1 + $0x140] sm:$0xff]  }
   0xb   :  { %615 = vmatpush3.bf16.msra.mxu0 %v685_v9  ;;  %v702_v26 = vld [vmem:[%s909_s1 + $0xf0] sm:$0xff]   ;;  %v706_v30 = vld [vmem:[%s909_s1 + $0xf8] sm:$0xff]   ;;  %v16_v36 = vld [vmem:[%s910_s0 + $0x8] sm:$0xff] }
   0xc   :  { %616 = vmatprep.subr.bf16.mxu0 %v688_v12  ;;  %v703_v27 = vld [vmem:[%s909_s1 + $0xb0] sm:$0xff]   ;;  %v709_v34 = vld [vmem:[%s909_s1 + $0xb8] sm:$0xff]   ;;  %462 = vmatprep.mubr.bf16.mxu0 %v557_v33  ;;  %v558_v37 = vcombine.low %v16_v36, %v16_v36  ;;  %v559_v38 = vcombine.high %v16_v36, %v16_v36  ;;  %v713_v39 = vld [vmem:[%s909_s1 + $0x100] sm:$0xff]  }
   0xd   :  { %637 = vmatpush3.bf16.msra.mxu1 %v687_v11  ;;  %v714_v40 = vld [vmem:[%s909_s1 + $0x148] sm:$0xff]   ;;  %v716_v42 = vld [vmem:[%s909_s1 + $0x150] sm:$0xff]   ;;  %v718_v44 = vld [vmem:[%s909_s1 + $0x158] sm:$0xff]  }
   0xe   :  { %638 = vmatprep.subr.bf16.mxu1 %v690_v14  ;;  %502 = vmatprep.mubr.bf16.mxu1 %v559_v38  ;;  %v715_v41 = vld [vmem:[%s909_s1 + $0x108] sm:$0xff]   ;;  %v717_v43 = vld [vmem:[%s909_s1 + $0x110] sm:$0xff]   ;;  %v719_v45 = vld [vmem:[%s909_s1 + $0x118] sm:$0xff]  }
   0xf   :  { %617 = vmatpush3.bf16.msra.mxu0 %v689_v13  ;;  %v720_v46 = vld [vmem:[%s909_s1 + $0x160] sm:$0xff]   ;;  %v17_v48 = vld [vmem:[%s910_s0 + $0x10] sm:$0xff]  ;;  %v722_v49 = vld [vmem:[%s909_s1 + $0x168] sm:$0xff]  }
  0x10   :  { %618 = vmatprep.subr.bf16.mxu0 %v692_v16  ;;  %v721_v47 = vld [vmem:[%s909_s1 + $0x120] sm:$0xff]   ;;  %v561_v50 = vcombine.high %v17_v48, %v17_v48  ;;  %v723_v51 = vld [vmem:[%s909_s1 + $0x128] sm:$0xff]   ;;  %v724_v52 = vld [vmem:[%s909_s1 + $0x170] sm:$0xff]   ;;  %v560_v56 = vcombine.low %v17_v48, %v17_v48 }
  0x11   :  { %639 = vmatpush3.bf16.msra.mxu1 %v691_v15  ;;  %v725_v53 = vld [vmem:[%s909_s1 + $0x130] sm:$0xff]   ;;  %v726_v54 = vld [vmem:[%s909_s1 + $0x178] sm:$0xff]   ;;  %v555_v58 = vld [vmem:[%s911_s2] ss:$0 sm:$0xff] }
  0x12   :  { %640 = vmatprep.subr.bf16.mxu1 %v694_v18  ;;  %v727_v55 = vld [vmem:[%s909_s1 + $0x138] sm:$0xff]  }
  0x13   :  { %619 = vmatpush3.bf16.msra.mxu0 %v693_v17 }
  0x14   :  { %620 = vmatprep.subr.bf16.mxu0 %v696_v20 }
  0x15   :  { %641 = vmatpush3.bf16.msra.mxu1 %v695_v19 }
  0x16   :  { %642 = vmatprep.subr.bf16.mxu1 %v698_v22 }
  0x17   :  { %621 = vmatpush3.bf16.msra.mxu0 %v697_v21 }
  0x18   :  { %622 = vmatprep.subr.bf16.mxu0 %v700_v24 }
  0x19   :  { %643 = vmatpush3.bf16.msra.mxu1 %v699_v23 }
  0x1a   :  { %644 = vmatprep.subr.bf16.mxu1 %v702_v26 }
  0x1b   :  { %623 = vmatpush3.bf16.msra.mxu0 %v701_v25 }
  0x1c   :  { %624 = vmatprep.subr.bf16.mxu0 %v704_v28 }
  0x1d   :  { %645 = vmatpush3.bf16.msra.mxu1 %v703_v27 }
  0x1e   :  { %646 = vmatprep.subr.bf16.mxu1 %v706_v30 }
  0x1f   :  { %625 = vmatpush3.bf16.msra.mxu0 %v705_v29 }
  0x20   :  { %654 = vmatprep.subr.bf16.mxu0 %v710_v35 }
  0x21   :  { %647 = vmatpush3.bf16.msra.mxu1 %v709_v34 }
  0x22   :  { %463 = vmatmul.mubr.bf16.vlgmr.msra.gmra.mrb[0].mxu0 %v556_v32 }
  0x23   :  { %655 = vmatpush3.bf16.msra.mxu0 %v713_v39  ;;  %542 = vmatprep.mubr.bf16.mxu0 %v561_v50 }
  0x24   :  { %503 = vmatmul.mubr.bf16.vlgmr.msra.gmra.mrb[0].mxu1 %v558_v37  ;;  %656 = vmatprep.subr.bf16.mxu0 %v714_v40 }
  0x27   :  { %657 = vmatpush3.bf16.msra.mxu0 %v715_v41 }
  0x28   :  { %658 = vmatprep.subr.bf16.mxu0 %v716_v42 }
  0x2b   :  { %659 = vmatpush3.bf16.msra.mxu0 %v717_v43 }
  0x2c   :  { %660 = vmatprep.subr.bf16.mxu0 %v718_v44 }
  0x2f   :  { %661 = vmatpush3.bf16.msra.mxu0 %v719_v45 }
  0x30   :  { %662 = vmatprep.subr.bf16.mxu0 %v720_v46 }
  0x33   :  { %663 = vmatpush3.bf16.msra.mxu0 %v721_v47 }
  0x34   :  { %664 = vmatprep.subr.bf16.mxu0 %v722_v49 }
  0x37   :  { %665 = vmatpush3.bf16.msra.mxu0 %v723_v51 }
  0x38   :  { %666 = vmatprep.subr.bf16.mxu0 %v724_v52 }
  0x3b   :  { %667 = vmatpush3.bf16.msra.mxu0 %v725_v53 }
  0x3c   :  { %668 = vmatprep.subr.bf16.mxu0 %v726_v54 }
  0x3f   :  { %669 = vmatpush3.bf16.msra.mxu0 %v727_v55 }
  0x42   :  { %543 = vmatmul.mubr.bf16.vlgmr.msra.gmra.mrb[4].mxu0 %v560_v56 }
  0xf5   :  { %v626_v57 = vpop.f32.mrb[0].mxu0 }
  0xf6   :  { %v627_v59 = vpop.f32.mrb[1].mxu0 }
  0xf7   :  { %v628_v60 = vadd.f32 %v627_v59, %v626_v57  ;;  %v629_v61 = vpop.f32.mrb[2].mxu0  ;;  %v648_v62 = vpop.f32.mrb[0].mxu1 }
  0xf8   :  { %v630_v63 = vpop.f32.mrb[3].mxu0  ;;  %v649_v0 = vpop.f32.mrb[1].mxu1 }
  0xf9   :  { %v465_v1 = vadd.f32 %v628_v60, %v555_v58  ;;  %v650_v2 = vadd.f32 %v649_v0, %v648_v62  ;;  %v651_v3 = vpop.f32.mrb[2].mxu1 }
  0xfa   :  { %v652_v4 = vpop.f32.mrb[3].mxu1 }
  0xfb   :  { %v505_v5 = vadd.f32 %v650_v2, %v465_v1 }
 0x115   :  { %v670_v6 = vpop.f32.mrb[4].mxu0 }
 0x116   :  { %v671_v7 = vpop.f32.mrb[5].mxu0 }
 0x117   :  { %v672_v8 = vadd.f32 %v671_v7, %v670_v6  ;;  %v673_v9 = vpop.f32.mrb[6].mxu0 }
 0x118   :  { %v674_v10 = vpop.f32.mrb[7].mxu0 }
 0x119   :  { %v545_v11 = vadd.f32 %v672_v8, %v505_v5 }
 0x11b   :  { %550 = vst [vmem:[%s912_s3] sm:$0xff] %v545_v11 }

</bundles_post_ra>
